<compile_context>
chip_gen: v5e
topology: v5e:2x2
jax: 0.10.0
libtpu: 0.0.40
codegen_flags: <defaults>
</compile_context>

<pallas_src>
import jax
import jax.numpy as jnp
from jax.experimental import pallas as pl
from jax.experimental.pallas import tpu as pltpu

INPUT_SIZE = 25
HIDDEN_SIZE = 5


def gru_cell_relu_kernel(x_ref, h_ref, wx_ref, wh_ref, b_ref, o_ref):
    """One GRUCell step + ReLU.

    x_ref  : (tb, 25)   batch tile of inputs
    h_ref  : (tb, 5)    batch tile of previous hidden state
    wx_ref : (25, 20)   packed input weights,  cols = [r | z | i_n | 0   ]
    wh_ref : (5, 20)    packed hidden weights, cols = [r | z | 0   | h_n ]
    b_ref  : (1, 20)    packed bias [b_r(ih+hh) | b_z(ih+hh) | b_in | b_hn]
    o_ref  : (tb, 5)    new hidden state after ReLU
    """
    x = x_ref[...]
    h = h_ref[...]

    # Two small MXU matmuls (no in-kernel concat of [x | h]).
    g = (jnp.dot(x, wx_ref[...], preferred_element_type=jnp.float32)
         + jnp.dot(h, wh_ref[...], preferred_element_type=jnp.float32)
         + b_ref[...])                                           # (tb, 20)

    H = HIDDEN_SIZE
    r = jax.nn.sigmoid(g[:, 0:H])
    z = jax.nn.sigmoid(g[:, H:2 * H])
    n = jnp.tanh(g[:, 2 * H:3 * H] + r * g[:, 3 * H:4 * H])

    h_new = (1.0 - z) * n + z * h
    o_ref[...] = jnp.maximum(h_new, 0.0).astype(o_ref.dtype)


def pack_gru_params(weight_ih, weight_hh, bias_ih, bias_hh):
    """Fold PyTorch GRUCell params into w_x (25,20), w_h (5,20), b (1,20).

    Column blocks (width H each): [r | z | i_n | h_n].  r/z biases are
    pre-summed.  Call ONCE; pure plumbing, constant-folds under jit.
    """
    H = HIDDEN_SIZE
    I = weight_ih.shape[1]

    wih_r, wih_z, wih_n = weight_ih[0:H], weight_ih[H:2 * H], weight_ih[2 * H:3 * H]
    whh_r, whh_z, whh_n = weight_hh[0:H], weight_hh[H:2 * H], weight_hh[2 * H:3 * H]

    zeros_x = jnp.zeros((I, H), weight_ih.dtype)   # x does not feed the h_n block
    zeros_h = jnp.zeros((H, H), weight_hh.dtype)   # h does not feed the i_n block

    w_x = jnp.concatenate([wih_r.T, wih_z.T, wih_n.T, zeros_x], axis=1)  # (25, 20)
    w_h = jnp.concatenate([whh_r.T, whh_z.T, zeros_h, whh_n.T], axis=1)  # (5, 20)

    b_r = bias_ih[0:H] + bias_hh[0:H]
    b_z = bias_ih[H:2 * H] + bias_hh[H:2 * H]
    b_in = bias_ih[2 * H:3 * H]
    b_hn = bias_hh[2 * H:3 * H]
    b_packed = jnp.concatenate([b_r, b_z, b_in, b_hn]).reshape(1, 4 * H)  # (1, 20)

    return w_x, w_h, b_packed


def _choose_batch_tile(B, cap=2048):
    """Pick a batch tile.

    - B <= cap: whole batch as one block (grid length 1).
    - B  > cap: tiles that are multiples of 8 sublanes, with an EVEN number of
      grid steps so v7x's two TensorCores split evenly; cap keeps the
      double-buffered VMEM footprint under v5e's 16 MiB default scoped limit.
    """
    if B <= cap:
        return B
    nt = pl.cdiv(B, cap)
    if nt % 2:
        nt += 1                      # even grid length for the 2-TC megacore
    tb = -(-B // nt)                 # ceil(B / nt)
    tb = ((tb + 7) // 8) * 8         # multiple of 8 sublanes
    return tb


def simple_gru_forward(x, h, w_x, w_h, b_packed):
    """simple_GRU.forward((x, states)) with pre-packed parameters."""
    B, I = x.shape
    H = h.shape[1]

    tb = _choose_batch_tile(B)
    grid = (pl.cdiv(B, tb),)

    return pl.pallas_call(
        gru_cell_relu_kernel,
        out_shape=jax.ShapeDtypeStruct((B, H), x.dtype),
        grid=grid,
        in_specs=[
            pl.BlockSpec((tb, I), lambda i: (i, 0)),         # x tile
            pl.BlockSpec((tb, H), lambda i: (i, 0)),         # h tile
            pl.BlockSpec((I, 4 * H), lambda i: (0, 0)),      # w_x (resident)
            pl.BlockSpec((H, 4 * H), lambda i: (0, 0)),      # w_h (resident)
            pl.BlockSpec((1, 4 * H), lambda i: (0, 0)),      # bias (resident)
        ],
        out_specs=pl.BlockSpec((tb, H), lambda i: (i, 0)),
        compiler_params=pltpu.CompilerParams(
            dimension_semantics=("parallel",)),              # megacore on v7x
    )(x, h, w_x, w_h, b_packed)


def _reference(x, h, weight_ih, weight_hh, bias_ih, bias_hh):
    """Pure-JAX reference of nn.GRUCell + ReLU (PyTorch semantics)."""
    gi = x @ weight_ih.T + bias_ih
    gh = h @ weight_hh.T + bias_hh
    H = HIDDEN_SIZE
    r = jax.nn.sigmoid(gi[:, :H] + gh[:, :H])
    z = jax.nn.sigmoid(gi[:, H:2 * H] + gh[:, H:2 * H])
    n = jnp.tanh(gi[:, 2 * H:] + r * gh[:, 2 * H:])
    h_new = (1.0 - z) * n + z * h
    return jnp.maximum(h_new, 0.0)


if __name__ == "__main__":
    key = jax.random.PRNGKey(0)
    k_x, k_h, k_wih, k_whh, k_bih, k_bhh = jax.random.split(key, 6)

    B = 2  # small batch, matches the module's single-step use

    # Deterministic parameter init mimicking PyTorch's U(-1/sqrt(H), 1/sqrt(H)).
    bound = 1.0 / (HIDDEN_SIZE ** 0.5)
    weight_ih = jax.random.uniform(
        k_wih, (3 * HIDDEN_SIZE, INPUT_SIZE), jnp.float32, -bound, bound)
    weight_hh = jax.random.uniform(
        k_whh, (3 * HIDDEN_SIZE, HIDDEN_SIZE), jnp.float32, -bound, bound)
    bias_ih = jax.random.uniform(
        k_bih, (3 * HIDDEN_SIZE,), jnp.float32, -bound, bound)
    bias_hh = jax.random.uniform(
        k_bhh, (3 * HIDDEN_SIZE,), jnp.float32, -bound, bound)

    # Inputs: inp = (x, states)
    x = jax.random.normal(k_x, (B, INPUT_SIZE), jnp.float32)
    states = jax.random.normal(k_h, (B, HIDDEN_SIZE), jnp.float32)

    # Pack once (hoisted out of the per-step path).
    w_x, w_h, b_packed = pack_gru_params(weight_ih, weight_hh, bias_ih, bias_hh)
    w_x = jax.block_until_ready(w_x)
    w_h = jax.block_until_ready(w_h)
    b_packed = jax.block_until_ready(b_packed)

    out = simple_gru_forward(x, states, w_x, w_h, b_packed)
    out = jax.block_until_ready(out)

    ref = _reference(x, states, weight_ih, weight_hh, bias_ih, bias_hh)
    assert out.shape == (B, HIDDEN_SIZE)
    assert jnp.allclose(out, ref, atol=1e-5, rtol=1e-5), "mismatch vs reference"

    # Sanity-check the multi-tile path (even grid split + partial last tile).
    B2 = 4100
    kx2, kh2 = jax.random.split(jax.random.PRNGKey(1))
    x2 = jax.random.normal(kx2, (B2, INPUT_SIZE), jnp.float32)
    h2 = jax.random.normal(kh2, (B2, HIDDEN_SIZE), jnp.float32)
    out2 = jax.block_until_ready(simple_gru_forward(x2, h2, w_x, w_h, b_packed))
    ref2 = _reference(x2, h2, weight_ih, weight_hh, bias_ih, bias_hh)
    assert jnp.allclose(out2, ref2, atol=1e-5, rtol=1e-5), "mismatch vs reference (large B)"

    print("KERNEL_OK")
</pallas_src>

<mosaic_0001>
module attributes {stable_mosaic.version = 11 : i64} {
  func.func @gru_cell_relu_kernel(%arg0: i32, %arg1: memref<2x25xf32, #tpu.memory_space<vmem>>, %arg2: memref<2x5xf32, #tpu.memory_space<vmem>>, %arg3: memref<25x20xf32, #tpu.memory_space<vmem>>, %arg4: memref<5x20xf32, #tpu.memory_space<vmem>>, %arg5: memref<1x20xf32, #tpu.memory_space<vmem>>, %arg6: memref<2x5xf32, #tpu.memory_space<vmem>>) attributes {dimension_semantics = [#tpu.dimension_semantics<parallel>], iteration_bounds = array<i64: 1>, scalar_prefetch = 0 : i64, scratch_operands = 0 : i64, tpu.core_type = #tpu.core_type<tc>, window_params = [{transform_indices = @transform_0, window_bounds = array<i64: 2, 25>}, {transform_indices = @transform_1, window_bounds = array<i64: 2, 5>}, {pipeline_mode = #tpu.pipeline_mode<synchronous>, transform_indices = @transform_2, window_bounds = array<i64: 25, 20>}, {pipeline_mode = #tpu.pipeline_mode<synchronous>, transform_indices = @transform_3, window_bounds = array<i64: 5, 20>}, {pipeline_mode = #tpu.pipeline_mode<synchronous>, transform_indices = @transform_4, window_bounds = array<i64: 1, 20>}, {transform_indices = @transform_5, window_bounds = array<i64: 2, 5>}]} {
    %c0 = arith.constant 0 : index
    %c0_0 = arith.constant 0 : index
    %0 = vector.load %arg1[%c0, %c0_0] : memref<2x25xf32, #tpu.memory_space<vmem>>, vector<2x25xf32>
    %c0_1 = arith.constant 0 : index
    %c0_2 = arith.constant 0 : index
    %1 = vector.load %arg2[%c0_1, %c0_2] : memref<2x5xf32, #tpu.memory_space<vmem>>, vector<2x5xf32>
    %c0_3 = arith.constant 0 : index
    %c0_4 = arith.constant 0 : index
    %2 = vector.load %arg3[%c0_3, %c0_4] : memref<25x20xf32, #tpu.memory_space<vmem>>, vector<25x20xf32>
    %cst = arith.constant dense<0.000000e+00> : vector<2x20xf32>
    %3 = tpu.matmul %0, %2, %cst {dimension_numbers = #tpu.dot_dimension_numbers<[1], [0], [0], [1], [0, 0, 1, 1], [], []>} : vector<2x25xf32>, vector<25x20xf32>, vector<2x20xf32> -> vector<2x20xf32>
    %c0_5 = arith.constant 0 : index
    %c0_6 = arith.constant 0 : index
    %4 = vector.load %arg4[%c0_5, %c0_6] : memref<5x20xf32, #tpu.memory_space<vmem>>, vector<5x20xf32>
    %cst_7 = arith.constant dense<0.000000e+00> : vector<2x20xf32>
    %5 = tpu.matmul %1, %4, %cst_7 {dimension_numbers = #tpu.dot_dimension_numbers<[1], [0], [0], [1], [0, 0, 1, 1], [], []>} : vector<2x5xf32>, vector<5x20xf32>, vector<2x20xf32> -> vector<2x20xf32>
    %6 = arith.addf %3, %5 : vector<2x20xf32>
    %c0_8 = arith.constant 0 : index
    %c0_9 = arith.constant 0 : index
    %7 = vector.load %arg5[%c0_8, %c0_9] : memref<1x20xf32, #tpu.memory_space<vmem>>, vector<1x20xf32>
    %8 = vector.broadcast %7 : vector<1x20xf32> to vector<2x20xf32>
    %9 = arith.addf %6, %8 : vector<2x20xf32>
    %10 = vector.extract_strided_slice %9 {offsets = [0, 0], sizes = [2, 5], strides = [1, 1]} : vector<2x20xf32> to vector<2x5xf32>
    %11 = arith.negf %10 : vector<2x5xf32>
    %12 = math.exp %11 : vector<2x5xf32>
    %cst_10 = arith.constant 1.000000e+00 : f32
    %13 = vector.broadcast %cst_10 : f32 to vector<2x5xf32>
    %14 = arith.addf %13, %12 : vector<2x5xf32>
    %15 = arith.divf %13, %14 : vector<2x5xf32>
    %16 = vector.extract_strided_slice %9 {offsets = [0, 5], sizes = [2, 5], strides = [1, 1]} : vector<2x20xf32> to vector<2x5xf32>
    %17 = arith.negf %16 : vector<2x5xf32>
    %18 = math.exp %17 : vector<2x5xf32>
    %cst_11 = arith.constant 1.000000e+00 : f32
    %19 = vector.broadcast %cst_11 : f32 to vector<2x5xf32>
    %20 = arith.addf %19, %18 : vector<2x5xf32>
    %21 = arith.divf %19, %20 : vector<2x5xf32>
    %22 = vector.extract_strided_slice %9 {offsets = [0, 10], sizes = [2, 5], strides = [1, 1]} : vector<2x20xf32> to vector<2x5xf32>
    %23 = vector.extract_strided_slice %9 {offsets = [0, 15], sizes = [2, 5], strides = [1, 1]} : vector<2x20xf32> to vector<2x5xf32>
    %24 = arith.mulf %15, %23 : vector<2x5xf32>
    %25 = arith.addf %22, %24 : vector<2x5xf32>
    %26 = math.tanh %25 : vector<2x5xf32>
    %cst_12 = arith.constant 1.000000e+00 : f32
    %27 = vector.broadcast %cst_12 : f32 to vector<2x5xf32>
    %28 = arith.subf %27, %21 : vector<2x5xf32>
    %29 = arith.mulf %28, %26 : vector<2x5xf32>
    %30 = arith.mulf %21, %1 : vector<2x5xf32>
    %31 = arith.addf %29, %30 : vector<2x5xf32>
    %cst_13 = arith.constant 0.000000e+00 : f32
    %32 = vector.broadcast %cst_13 : f32 to vector<2x5xf32>
    %33 = arith.maximumf %31, %32 : vector<2x5xf32>
    %c0_14 = arith.constant 0 : index
    %c0_15 = arith.constant 0 : index
    %34 = vector.load %arg6[%c0_14, %c0_15] : memref<2x5xf32, #tpu.memory_space<vmem>>, vector<2x5xf32>
    tpu.vector_store %arg6[%c0_14, %c0_15], %33 {strides = array<i32>} : memref<2x5xf32, #tpu.memory_space<vmem>>, vector<2x5xf32>,
    return
  }
  func.func @transform_0(%arg0: i32) -> (i32, i32) {
    %c0_i32 = arith.constant 0 : i32
    %c0_i32_0 = arith.constant 0 : i32
    return %arg0, %c0_i32 : i32, i32
  }
  func.func @transform_1(%arg0: i32) -> (i32, i32) {
    %c0_i32 = arith.constant 0 : i32
    %c0_i32_0 = arith.constant 0 : i32
    return %arg0, %c0_i32 : i32, i32
  }
  func.func @transform_2(%arg0: i32) -> (i32, i32) {
    %c0_i32 = arith.constant 0 : i32
    %c0_i32_0 = arith.constant 0 : i32
    %c0_i32_1 = arith.constant 0 : i32
    return %c0_i32, %c0_i32_0 : i32, i32
  }
  func.func @transform_3(%arg0: i32) -> (i32, i32) {
    %c0_i32 = arith.constant 0 : i32
    %c0_i32_0 = arith.constant 0 : i32
    %c0_i32_1 = arith.constant 0 : i32
    return %c0_i32, %c0_i32_0 : i32, i32
  }
  func.func @transform_4(%arg0: i32) -> (i32, i32) {
    %c0_i32 = arith.constant 0 : i32
    %c0_i32_0 = arith.constant 0 : i32
    %c0_i32_1 = arith.constant 0 : i32
    return %c0_i32, %c0_i32_0 : i32, i32
  }
  func.func @transform_5(%arg0: i32) -> (i32, i32) {
    %c0_i32 = arith.constant 0 : i32
    %c0_i32_0 = arith.constant 0 : i32
    return %arg0, %c0_i32 : i32, i32
  }
}

</mosaic_0001>

<bundles_post_ra>
// kernel: tpu_custom_call.1
= control target key start
LH: loop header
LB: loop body
LE: loop exit
PB: predicated region body
PF: predicated region fallthrough
CT: control target
= control target key end

     0   :  { %vm60_vm0 = vcmask 1040384   ;;  %vm32_vm1 = vcmask 1044480   ;;  %vm28_vm2 = vcmask 39936   ;;  %s258_s0 = inlined_call_operand.vmem [shape: f32[2,25], index: 0, kind: input, shape index: {}]   ;;  %s259_s1 = inlined_call_operand.vmem [shape: f32[2,5], index: 1, kind: input, shape index: {}]   ;;  %s260_s2 = inlined_call_operand.vmem [shape: f32[25,20], index: 2, kind: input, shape index: {}]   ;;  %s261_s3 = inlined_call_operand.vmem [shape: f32[5,20], index: 3, kind: input, shape index: {}]   ;;  %s262_s4 = inlined_call_operand.vmem [shape: f32[1,20], index: 4, kind: input, shape index: {}]   ;;  %s263_s5 = inlined_call_operand.hbm [shape: f32[2,5], index: 5, kind: output, shape index: {}]  }
   0x1   :  { %v26_v0 = vld [vmem:[%s260_s2 + $0x18] sm:$0x1]  ;;  %v25_v1 = vld [vmem:[%s260_s2 + $0x10] sm:$0xff]  ;;  %v27_v2 = vld [vmem:[%s261_s3] sm:$0x1f] }
   0x2   :  { %155 = vmatpush.msk.msra.mxu1 %vm60_vm0, %v26_v0  ;;  %v22_v3 = vld [vmem:[%s259_s1] sm:$0x3]  ;;  %v24_v4 = vld [vmem:[%s260_s2 + $0x8] sm:$0xff]  ;;  %153 = vmatpush.msk.msra.mxu0 %vm32_vm1, %v27_v2 }
   0x3   :  { %154 = vmatmul.msk.f32.vlgmr.msra.gmra.mxu0 %vm28_vm2, %v22_v3 }
   0x4   :  { %77 = vmatpush.msra.mxu1 %v25_v1 }
   0x5   :  { %10 = vsyncpa [#allocation3], 0  ;;  %v23_v5 = vld [vmem:[%s260_s2] sm:$0xff]  ;;  %vm56_vm3 = vcmask 203776   ;;  %s196_s7 = smov 113   ;;  %s198_s2 = smov 123  }
   0x6   :  { %78 = vmatpush.msra.mxu1 %v24_v4  ;;  %v21_v6 = vld [vmem:[%s258_s0] sm:$0x3]  ;;  %s197_s0 = smov 10   ;;  %s200_s8 = smov [#allocation2]   ;;  %vm135_vm8 = vcmask 33792  }
   0x7   :  { %v163_v8 = vld [vmem:[%s262_s4] ss:$0 sm:$0xff]  ;;  %s199_s4 = smov 5   ;;  %s142_s9 = sshll.u32 %s200_s8, 4  ;;  %s143_s9 = int_to_ptr.vmem [resolvable:$true] %s142_s9 }
   0x8   :  { %79 = vmatpush.msra.mxu1 %v23_v5  ;;  %s144_s12 = sshll.u32 %s263_s5, 4  ;;  %s145_s12 = int_to_ptr.hbm [resolvable:$true] %s144_s12 }
   0x9   :  { %156 = vmatmul.msk.f32.vlgmr.msra.gmra.mxu1 %vm56_vm3, %v21_v6 }
  0x80   :  { %v53_v7 = vpop.f32.mrf.mxu0 }
  0x86   :  { %v81_v9 = vpop.f32.mrf.mxu1 }
  0x87   :  { %v82_v10 = vadd.f32 %v81_v9, %v53_v7 }
  0x89   :  { %v88_v11 = vadd.f32 %v163_v8, %v82_v10 }
  0x8b   :  { %109 = vrot.lane.b32.xlu0 %v88_v11, %s196_s7  ;;  %v157_v12 = vmul.f32 -1.442695, %v88_v11 }
  0x8d   :  { %164 = vpow2.f32 %v157_v12 }
  0x93   :  { %v165_v13 = vpop.eup %164 }
  0x94   :  { %v92_v14 = vadd.f32 1.0, %v165_v13 }
  0x96   :  { %166 = vrcp.f32 %v92_v14  ;;  %v104_v20 = vand.u32 2147483648, %v92_v14  ;;  %vm98_vm5 = vweird.f32 %v92_v14  ;;  %v102_v21 = vand.u32 2147483647, %v92_v14 }
  0x98   :  { %v105_v23 = vor.u32 1.1754944e-38, %v104_v20  ;;  %vm103_vm7 = vcmp.eq.f32.partialorder %v102_v21, 8.507059e+37 }
  0x9c   :  { %v167_v15 = vpop.eup %166 }
  0x9d   :  { %v94_v16 = vmul.f32 %v167_v15, %v92_v14  ;;  %vm99_vm4 = vweird.f32 %v167_v15 }
  0x9e   :  { %vm100_vm6 = vmor %vm98_vm5, %vm99_vm4 }
  0x9f   :  { %v95_v17 = vsub.f32 1.0, %v94_v16 }
  0xa1   :  { %v96_v18 = vmul.f32 %v167_v15, %v95_v17 }
  0xa3   :  { %v97_v19 = vadd.f32 %v167_v15, %v96_v18 }
  0xa5   :  { %v101_v22 = vsel %vm100_vm6, %v167_v15, %v97_v19 }
  0xa6   :  { %v106_v25 = vsel %vm103_vm7, %v105_v23, %v101_v22 }
  0xa7   :  { %v119_v31 = vsub.f32 1.0, %v106_v25 }
  0xfd   :  { %v110_v24 = vpop.permute.xlu0 %109 }
  0xfe   :  { %v112_v26 = vmul.f32 %v110_v24, %v106_v25 }
 0x100   :  { %114 = vrot.lane.b32.xlu0 %v112_v26, %s197_s0 }
 0x172   :  { %v115_v27 = vpop.permute.xlu0 %114 }
 0x173   :  { %v117_v28 = vadd.f32 %v115_v27, %v88_v11 }
 0x175   :  { %168 = vtanh.f32 %v117_v28 }
 0x17b   :  { %v169_v29 = vpop.eup %168 }
 0x17c   :  { %121 = vrot.lane.b32.xlu1 %v169_v29, %s198_s2 }
 0x184   :  { %125 = vrot.lane.b32.xlu1 %v22_v3, %s199_s4 }
 0x1ee   :  { %v122_v30 = vpop.permute.xlu1 %121 }
 0x1ef   :  { %v124_v33 = vmul.f32 %v122_v30, %v119_v31 }
 0x1f6   :  { %v126_v32 = vpop.permute.xlu1 %125 }
 0x1f7   :  { %v128_v34 = vmul.f32 %v126_v32, %v106_v25 }
 0x1f9   :  { %v129_v35 = vadd.f32 %v128_v34, %v124_v33 }
 0x1fb   :  { %v130_v36 = vmax.f32 %v129_v35, 0.0 }
 0x1fd   :  { %132 = vrot.lane.b32.xlu2 %v130_v36, %s198_s2 }
 0x257   :  { %v133_v37 = vpop.permute.xlu2 %132 }
 0x258   :  { %136 = vst.msk [vmem:[#allocation2] sm:$0x3] %vm135_vm8, %v133_v37 }
 0x259   :  { %147 = dma.vmem_to_hbm [thread:$0]  %s143_s9, 32, %s145_s12, [#allocation3]  }
 0x25a   :  { %194 = dma.done.wait [#allocation3], 32  }
 0x25b   :  { %195 = vsyncadd [#allocation3], 4294967264 }
 0x25c   :  { %152 = vsyncpa [#allocation3], 1 }

</bundles_post_ra>
